<compile_context>
chip_gen: v7x
topology: tpu7x:2x2x1
jax: 0.10.0
libtpu: 0.0.40
codegen_flags: <defaults>
</compile_context>

<pallas_src>
import functools

import jax
import jax.numpy as jnp
from jax.experimental import pallas as pl
from jax.experimental.pallas import tpu as pltpu


def cvae_kernel(
    x_ref, eps_ref,
    w1_ref, b1_ref,
    w2_ref, b2_ref,        # fused, lane-padded (mu | logvar | 0) head: [H, OUT_W], [1, OUT_W]
    w3z_ref, w3x_ref, b3_ref,
    w4_ref, b4_ref,        # [1, H] row, [1, 1]
    out_ref,               # [bm, OUT_W] slab: cols [0,L)=mu, [L,2L)=logvar, col 2L=recon, rest 0
    *, latent_dim,
):
    L = latent_dim
    x = x_ref[...]                                                  # [bm, D_in]

    # ---- encode: fc1 -> relu -> fused (mu | logvar | 0-pad) head -------------
    h1 = jnp.dot(x, w1_ref[...], preferred_element_type=jnp.float32) + b1_ref[...]
    h1 = jnp.maximum(h1, 0.0)                                       # relu
    ml = jnp.dot(h1, w2_ref[...], preferred_element_type=jnp.float32) + b2_ref[...]
    mu = ml[:, :L]                                                  # [bm, L]
    logvar = ml[:, L:2 * L]                                         # [bm, L]

    # ---- reparameterize (clamps are local, as in the PyTorch module) ---------
    std = jnp.exp(0.5 * jnp.clip(logvar, -10.0, 10.0))
    z = jnp.clip(mu, -10.0, 10.0) + eps_ref[...] * std              # [bm, L]

    # ---- decode: cat([z, x]) @ W3 == z @ W3_z + x @ W3_x ---------------------
    h3 = (jnp.dot(z, w3z_ref[...], preferred_element_type=jnp.float32)
          + jnp.dot(x, w3x_ref[...], preferred_element_type=jnp.float32)
          + b3_ref[...])
    h3 = jnp.maximum(h3, 0.0)                                       # relu

    # fc4 (N = 1): VPU multiply + lane reduce instead of a <1%-utilized MXU matmul
    recon = jnp.sum(h3 * w4_ref[...], axis=-1, keepdims=True) + b4_ref[...]   # [bm, 1]

    # ---- single lane-dense output slab ---------------------------------------
    # ml already holds mu | logvar | zeros; drop recon into column 2L via select.
    col = jax.lax.broadcasted_iota(jnp.int32, ml.shape, 1)
    out_ref[...] = jnp.where(col == 2 * L, jnp.broadcast_to(recon, ml.shape), ml)


def cvae_forward(x_cond, eps, params):
    B, D_in = x_cond.shape
    H = params["w1"].shape[1]
    L = params["wmu"].shape[1]
    out_w = pl.cdiv(2 * L + 1, 128) * 128          # lane-dense slab width (>=128)

    # Fused + lane-padded encoder head (built once, outside the kernel).
    w2 = (jnp.zeros((H, out_w), jnp.float32)
          .at[:, :L].set(params["wmu"])
          .at[:, L:2 * L].set(params["wlv"]))
    b2 = (jnp.zeros((1, out_w), jnp.float32)
          .at[:, :L].set(params["bmu"])
          .at[:, L:2 * L].set(params["blv"]))

    w3 = params["w3"]                              # [L + D_in, H]
    w3z, w3x = w3[:L, :], w3[L:, :]
    b1 = params["b1"].reshape(1, -1)
    b3 = params["b3"].reshape(1, -1)
    w4r = params["w4"].reshape(1, -1)              # [1, H] row (for the VPU reduce)
    b4 = params["b4"].reshape(1, 1)

    # Batch-parallel grid: weights stay resident (constant index maps); on v7x
    # the "parallel" axis lets both TensorCores split large batches. For small
    # batches this collapses to a single grid step.
    bm = 256 if (B % 256 == 0) else B
    grid = (B // bm,)

    kernel = functools.partial(cvae_kernel, latent_dim=L)

    slab = pl.pallas_call(
        kernel,
        out_shape=jax.ShapeDtypeStruct((B, out_w), jnp.float32),
        grid=grid,
        in_specs=[
            pl.BlockSpec((bm, D_in), lambda i: (i, 0)),     # x
            pl.BlockSpec((bm, L), lambda i: (i, 0)),        # eps
            pl.BlockSpec((D_in, H), lambda i: (0, 0)),      # w1
            pl.BlockSpec((1, H), lambda i: (0, 0)),         # b1
            pl.BlockSpec((H, out_w), lambda i: (0, 0)),     # fused head W
            pl.BlockSpec((1, out_w), lambda i: (0, 0)),     # fused head b
            pl.BlockSpec((L, H), lambda i: (0, 0)),         # w3 (z part)
            pl.BlockSpec((D_in, H), lambda i: (0, 0)),      # w3 (x part)
            pl.BlockSpec((1, H), lambda i: (0, 0)),         # b3
            pl.BlockSpec((1, H), lambda i: (0, 0)),         # w4 row
            pl.BlockSpec((1, 1), lambda i: (0, 0)),         # b4
        ],
        out_specs=pl.BlockSpec((bm, out_w), lambda i: (i, 0)),
        compiler_params=pltpu.CompilerParams(dimension_semantics=("parallel",)),
    )(x_cond, eps, params["w1"], b1, w2, b2, w3z, w3x, b3, w4r, b4)

    mu = slab[:, :L]
    logvar = slab[:, L:2 * L]
    recon = slab[:, 2 * L:2 * L + 1]
    return recon, mu, logvar


def init_params(key, input_dim, hidden_dim, latent_dim):
    ks = jax.random.split(key, 10)

    def lin(kw, kb, fan_in, fan_out):
        # deterministic, PyTorch-like uniform(-1/sqrt(fan_in), 1/sqrt(fan_in))
        bound = 1.0 / jnp.sqrt(fan_in)
        w = jax.random.uniform(kw, (fan_in, fan_out), jnp.float32, -bound, bound)
        b = jax.random.uniform(kb, (fan_out,), jnp.float32, -bound, bound)
        return w, b

    w1, b1 = lin(ks[0], ks[1], input_dim, hidden_dim)
    wmu, bmu = lin(ks[2], ks[3], hidden_dim, latent_dim)
    wlv, blv = lin(ks[4], ks[5], hidden_dim, latent_dim)
    w3, b3 = lin(ks[6], ks[7], latent_dim + input_dim, hidden_dim)
    w4, b4 = lin(ks[8], ks[9], hidden_dim, 1)
    return dict(w1=w1, b1=b1, wmu=wmu, bmu=bmu, wlv=wlv, blv=blv,
                w3=w3, b3=b3, w4=w4, b4=b4)


if __name__ == "__main__":
    key = jax.random.PRNGKey(0)
    k_param, k_x, k_eps = jax.random.split(key, 3)

    B, INPUT_DIM, HIDDEN_DIM, LATENT_DIM = 8, 16, 32, 16

    params = init_params(k_param, INPUT_DIM, HIDDEN_DIM, LATENT_DIM)
    x_cond = jax.random.normal(k_x, (B, INPUT_DIM), jnp.float32)
    # TODO(synk): torch.randn_like's internal RNG has no identical in-kernel
    # equivalent; eps is generated in plain JAX for determinism (could use
    # pltpu.prng_seed + pltpu.stateful_normal inside the kernel instead).
    eps = jax.random.normal(k_eps, (B, LATENT_DIM), jnp.float32)

    recon, mu, logvar = cvae_forward(x_cond, eps, params)
    jax.block_until_ready((recon, mu, logvar))

    # sanity check against a pure-JAX reference of the same math
    def ref(x, e, p):
        h1 = jnp.maximum(x @ p["w1"] + p["b1"], 0)
        mu_r = h1 @ p["wmu"] + p["bmu"]
        lv_r = h1 @ p["wlv"] + p["blv"]
        std = jnp.exp(0.5 * jnp.clip(lv_r, -10, 10))
        z = jnp.clip(mu_r, -10, 10) + e * std
        zc = jnp.concatenate([z, x], axis=1)
        h3 = jnp.maximum(zc @ p["w3"] + p["b3"], 0)
        return h3 @ p["w4"] + p["b4"], mu_r, lv_r

    r_ref, mu_ref_v, lv_ref_v = ref(x_cond, eps, params)
    assert jnp.allclose(recon, r_ref, atol=1e-5)
    assert jnp.allclose(mu, mu_ref_v, atol=1e-5)
    assert jnp.allclose(logvar, lv_ref_v, atol=1e-5)

    print("KERNEL_OK")
</pallas_src>

<mosaic_0001>
module attributes {stable_mosaic.version = 11 : i64} {
  func.func @cvae_kernel(%arg0: i32, %arg1: memref<8x16xf32, #tpu.memory_space<vmem>>, %arg2: memref<8x16xf32, #tpu.memory_space<vmem>>, %arg3: memref<16x32xf32, #tpu.memory_space<vmem>>, %arg4: memref<1x32xf32, #tpu.memory_space<vmem>>, %arg5: memref<32x128xf32, #tpu.memory_space<vmem>>, %arg6: memref<1x128xf32, #tpu.memory_space<vmem>>, %arg7: memref<16x32xf32, #tpu.memory_space<vmem>>, %arg8: memref<16x32xf32, #tpu.memory_space<vmem>>, %arg9: memref<1x32xf32, #tpu.memory_space<vmem>>, %arg10: memref<1x32xf32, #tpu.memory_space<vmem>>, %arg11: memref<1x1xf32, #tpu.memory_space<vmem>>, %arg12: memref<8x128xf32, #tpu.memory_space<vmem>>) attributes {dimension_semantics = [#tpu.dimension_semantics<parallel>], iteration_bounds = array<i64: 1>, scalar_prefetch = 0 : i64, scratch_operands = 0 : i64, tpu.core_type = #tpu.core_type<tc>, window_params = [{transform_indices = @transform_0, window_bounds = array<i64: 8, 16>}, {transform_indices = @transform_1, window_bounds = array<i64: 8, 16>}, {pipeline_mode = #tpu.pipeline_mode<synchronous>, transform_indices = @transform_2, window_bounds = array<i64: 16, 32>}, {pipeline_mode = #tpu.pipeline_mode<synchronous>, transform_indices = @transform_3, window_bounds = array<i64: 1, 32>}, {pipeline_mode = #tpu.pipeline_mode<synchronous>, transform_indices = @transform_4, window_bounds = array<i64: 32, 128>}, {pipeline_mode = #tpu.pipeline_mode<synchronous>, transform_indices = @transform_5, window_bounds = array<i64: 1, 128>}, {pipeline_mode = #tpu.pipeline_mode<synchronous>, transform_indices = @transform_6, window_bounds = array<i64: 16, 32>}, {pipeline_mode = #tpu.pipeline_mode<synchronous>, transform_indices = @transform_7, window_bounds = array<i64: 16, 32>}, {pipeline_mode = #tpu.pipeline_mode<synchronous>, transform_indices = @transform_8, window_bounds = array<i64: 1, 32>}, {pipeline_mode = #tpu.pipeline_mode<synchronous>, transform_indices = @transform_9, window_bounds = array<i64: 1, 32>}, {pipeline_mode = #tpu.pipeline_mode<synchronous>, transform_indices = @transform_10, window_bounds = array<i64: 1, 1>}, {transform_indices = @transform_11, window_bounds = array<i64: 8, 128>}]} {
    %c0 = arith.constant 0 : index
    %c0_0 = arith.constant 0 : index
    %0 = vector.load %arg1[%c0, %c0_0] : memref<8x16xf32, #tpu.memory_space<vmem>>, vector<8x16xf32>
    %c0_1 = arith.constant 0 : index
    %c0_2 = arith.constant 0 : index
    %1 = vector.load %arg3[%c0_1, %c0_2] : memref<16x32xf32, #tpu.memory_space<vmem>>, vector<16x32xf32>
    %cst = arith.constant dense<0.000000e+00> : vector<8x32xf32>
    %2 = tpu.matmul %0, %1, %cst {dimension_numbers = #tpu.dot_dimension_numbers<[1], [0], [0], [1], [0, 0, 1, 1], [], []>} : vector<8x16xf32>, vector<16x32xf32>, vector<8x32xf32> -> vector<8x32xf32>
    %c0_3 = arith.constant 0 : index
    %c0_4 = arith.constant 0 : index
    %3 = vector.load %arg4[%c0_3, %c0_4] : memref<1x32xf32, #tpu.memory_space<vmem>>, vector<1x32xf32>
    %4 = vector.broadcast %3 : vector<1x32xf32> to vector<8x32xf32>
    %5 = arith.addf %2, %4 : vector<8x32xf32>
    %cst_5 = arith.constant 0.000000e+00 : f32
    %6 = vector.broadcast %cst_5 : f32 to vector<8x32xf32>
    %7 = arith.maximumf %5, %6 : vector<8x32xf32>
    %c0_6 = arith.constant 0 : index
    %c0_7 = arith.constant 0 : index
    %8 = vector.load %arg5[%c0_6, %c0_7] : memref<32x128xf32, #tpu.memory_space<vmem>>, vector<32x128xf32>
    %cst_8 = arith.constant dense<0.000000e+00> : vector<8x128xf32>
    %9 = tpu.matmul %7, %8, %cst_8 {dimension_numbers = #tpu.dot_dimension_numbers<[1], [0], [0], [1], [0, 0, 1, 1], [], []>} : vector<8x32xf32>, vector<32x128xf32>, vector<8x128xf32> -> vector<8x128xf32>
    %c0_9 = arith.constant 0 : index
    %c0_10 = arith.constant 0 : index
    %10 = vector.load %arg6[%c0_9, %c0_10] : memref<1x128xf32, #tpu.memory_space<vmem>>, vector<1x128xf32>
    %11 = vector.broadcast %10 : vector<1x128xf32> to vector<8x128xf32>
    %12 = arith.addf %9, %11 : vector<8x128xf32>
    %13 = vector.extract_strided_slice %12 {offsets = [0, 0], sizes = [8, 16], strides = [1, 1]} : vector<8x128xf32> to vector<8x16xf32>
    %14 = vector.extract_strided_slice %12 {offsets = [0, 16], sizes = [8, 16], strides = [1, 1]} : vector<8x128xf32> to vector<8x16xf32>
    %cst_11 = arith.constant -1.000000e+01 : f32
    %cst_12 = arith.constant 1.000000e+01 : f32
    %15 = vector.broadcast %cst_11 : f32 to vector<8x16xf32>
    %16 = arith.maximumf %15, %14 : vector<8x16xf32>
    %17 = vector.broadcast %cst_12 : f32 to vector<8x16xf32>
    %18 = arith.minimumf %17, %16 : vector<8x16xf32>
    %cst_13 = arith.constant 5.000000e-01 : f32
    %19 = vector.broadcast %cst_13 : f32 to vector<8x16xf32>
    %20 = arith.mulf %19, %18 : vector<8x16xf32>
    %21 = math.exp %20 : vector<8x16xf32>
    %cst_14 = arith.constant -1.000000e+01 : f32
    %cst_15 = arith.constant 1.000000e+01 : f32
    %22 = vector.broadcast %cst_14 : f32 to vector<8x16xf32>
    %23 = arith.maximumf %22, %13 : vector<8x16xf32>
    %24 = vector.broadcast %cst_15 : f32 to vector<8x16xf32>
    %25 = arith.minimumf %24, %23 : vector<8x16xf32>
    %c0_16 = arith.constant 0 : index
    %c0_17 = arith.constant 0 : index
    %26 = vector.load %arg2[%c0_16, %c0_17] : memref<8x16xf32, #tpu.memory_space<vmem>>, vector<8x16xf32>
    %27 = arith.mulf %26, %21 : vector<8x16xf32>
    %28 = arith.addf %25, %27 : vector<8x16xf32>
    %c0_18 = arith.constant 0 : index
    %c0_19 = arith.constant 0 : index
    %29 = vector.load %arg7[%c0_18, %c0_19] : memref<16x32xf32, #tpu.memory_space<vmem>>, vector<16x32xf32>
    %cst_20 = arith.constant dense<0.000000e+00> : vector<8x32xf32>
    %30 = tpu.matmul %28, %29, %cst_20 {dimension_numbers = #tpu.dot_dimension_numbers<[1], [0], [0], [1], [0, 0, 1, 1], [], []>} : vector<8x16xf32>, vector<16x32xf32>, vector<8x32xf32> -> vector<8x32xf32>
    %c0_21 = arith.constant 0 : index
    %c0_22 = arith.constant 0 : index
    %31 = vector.load %arg8[%c0_21, %c0_22] : memref<16x32xf32, #tpu.memory_space<vmem>>, vector<16x32xf32>
    %cst_23 = arith.constant dense<0.000000e+00> : vector<8x32xf32>
    %32 = tpu.matmul %0, %31, %cst_23 {dimension_numbers = #tpu.dot_dimension_numbers<[1], [0], [0], [1], [0, 0, 1, 1], [], []>} : vector<8x16xf32>, vector<16x32xf32>, vector<8x32xf32> -> vector<8x32xf32>
    %33 = arith.addf %30, %32 : vector<8x32xf32>
    %c0_24 = arith.constant 0 : index
    %c0_25 = arith.constant 0 : index
    %34 = vector.load %arg9[%c0_24, %c0_25] : memref<1x32xf32, #tpu.memory_space<vmem>>, vector<1x32xf32>
    %35 = vector.broadcast %34 : vector<1x32xf32> to vector<8x32xf32>
    %36 = arith.addf %33, %35 : vector<8x32xf32>
    %cst_26 = arith.constant 0.000000e+00 : f32
    %37 = vector.broadcast %cst_26 : f32 to vector<8x32xf32>
    %38 = arith.maximumf %36, %37 : vector<8x32xf32>
    %c0_27 = arith.constant 0 : index
    %c0_28 = arith.constant 0 : index
    %39 = vector.load %arg10[%c0_27, %c0_28] : memref<1x32xf32, #tpu.memory_space<vmem>>, vector<1x32xf32>
    %40 = vector.broadcast %39 : vector<1x32xf32> to vector<8x32xf32>
    %41 = arith.mulf %38, %40 : vector<8x32xf32>
    %cst_29 = arith.constant dense<0.000000e+00> : vector<8xf32>
    %42 = vector.multi_reduction <add>, %41, %cst_29 [1] : vector<8x32xf32> to vector<8xf32>
    %43 = vector.shape_cast %42 : vector<8xf32> to vector<8x1xf32>
    %c0_30 = arith.constant 0 : index
    %c0_31 = arith.constant 0 : index
    %44 = vector.load %arg11[%c0_30, %c0_31] : memref<1x1xf32, #tpu.memory_space<vmem>>, vector<1x1xf32>
    %45 = vector.broadcast %44 : vector<1x1xf32> to vector<8x1xf32>
    %46 = arith.addf %43, %45 : vector<8x1xf32>
    %47 = tpu.iota {dimensions = array<i32: 1>} : vector<8x128xi32>
    %c32_i32 = arith.constant 32 : i32
    %48 = vector.broadcast %c32_i32 : i32 to vector<8x128xi32>
    %49 = arith.cmpi eq, %47, %48 : vector<8x128xi32>
    %50 = vector.shape_cast %46 : vector<8x1xf32> to vector<8x1xf32>
    %51 = vector.broadcast %50 : vector<8x1xf32> to vector<8x128xf32>
    %52 = arith.select %49, %51, %12 : vector<8x128xi1>, vector<8x128xf32>
    %c0_32 = arith.constant 0 : index
    %c0_33 = arith.constant 0 : index
    %53 = vector.load %arg12[%c0_32, %c0_33] : memref<8x128xf32, #tpu.memory_space<vmem>>, vector<8x128xf32>
    tpu.vector_store %arg12[%c0_32, %c0_33], %52 {strides = array<i32>} : memref<8x128xf32, #tpu.memory_space<vmem>>, vector<8x128xf32>,
    return
  }
  func.func @transform_0(%arg0: i32) -> (i32, i32) {
    %c0_i32 = arith.constant 0 : i32
    %c0_i32_0 = arith.constant 0 : i32
    return %arg0, %c0_i32 : i32, i32
  }
  func.func @transform_1(%arg0: i32) -> (i32, i32) {
    %c0_i32 = arith.constant 0 : i32
    %c0_i32_0 = arith.constant 0 : i32
    return %arg0, %c0_i32 : i32, i32
  }
  func.func @transform_2(%arg0: i32) -> (i32, i32) {
    %c0_i32 = arith.constant 0 : i32
    %c0_i32_0 = arith.constant 0 : i32
    %c0_i32_1 = arith.constant 0 : i32
    return %c0_i32, %c0_i32_0 : i32, i32
  }
  func.func @transform_3(%arg0: i32) -> (i32, i32) {
    %c0_i32 = arith.constant 0 : i32
    %c0_i32_0 = arith.constant 0 : i32
    %c0_i32_1 = arith.constant 0 : i32
    return %c0_i32, %c0_i32_0 : i32, i32
  }
  func.func @transform_4(%arg0: i32) -> (i32, i32) {
    %c0_i32 = arith.constant 0 : i32
    %c0_i32_0 = arith.constant 0 : i32
    %c0_i32_1 = arith.constant 0 : i32
    return %c0_i32, %c0_i32_0 : i32, i32
  }
  func.func @transform_5(%arg0: i32) -> (i32, i32) {
    %c0_i32 = arith.constant 0 : i32
    %c0_i32_0 = arith.constant 0 : i32
    %c0_i32_1 = arith.constant 0 : i32
    return %c0_i32, %c0_i32_0 : i32, i32
  }
  func.func @transform_6(%arg0: i32) -> (i32, i32) {
    %c0_i32 = arith.constant 0 : i32
    %c0_i32_0 = arith.constant 0 : i32
    %c0_i32_1 = arith.constant 0 : i32
    return %c0_i32, %c0_i32_0 : i32, i32
  }
  func.func @transform_7(%arg0: i32) -> (i32, i32) {
    %c0_i32 = arith.constant 0 : i32
    %c0_i32_0 = arith.constant 0 : i32
    %c0_i32_1 = arith.constant 0 : i32
    return %c0_i32, %c0_i32_0 : i32, i32
  }
  func.func @transform_8(%arg0: i32) -> (i32, i32) {
    %c0_i32 = arith.constant 0 : i32
    %c0_i32_0 = arith.constant 0 : i32
    %c0_i32_1 = arith.constant 0 : i32
    return %c0_i32, %c0_i32_0 : i32, i32
  }
  func.func @transform_9(%arg0: i32) -> (i32, i32) {
    %c0_i32 = arith.constant 0 : i32
    %c0_i32_0 = arith.constant 0 : i32
    %c0_i32_1 = arith.constant 0 : i32
    return %c0_i32, %c0_i32_0 : i32, i32
  }
  func.func @transform_10(%arg0: i32) -> (i32, i32) {
    %c0_i32 = arith.constant 0 : i32
    %c0_i32_0 = arith.constant 0 : i32
    %c0_i32_1 = arith.constant 0 : i32
    return %c0_i32, %c0_i32_0 : i32, i32
  }
  func.func @transform_11(%arg0: i32) -> (i32, i32) {
    %c0_i32 = arith.constant 0 : i32
    %c0_i32_0 = arith.constant 0 : i32
    return %arg0, %c0_i32 : i32, i32
  }
}

</mosaic_0001>

<bundles_post_ra>
// kernel: tpu_custom_call.1
= control target key start
LH: loop header
LB: loop body
LE: loop exit
PB: predicated region body
PF: predicated region fallthrough
CT: control target
= control target key end

     0   :  { %s901_s0 = inlined_call_operand.hbm [shape: f32[8,16], index: 0, kind: input, shape index: {}]   ;;  %s902_s1 = inlined_call_operand.hbm [shape: f32[8,16], index: 1, kind: input, shape index: {}]   ;;  %s903_s2 = inlined_call_operand.hbm [shape: f32[16,32], index: 2, kind: input, shape index: {}]   ;;  %s904_s3 = inlined_call_operand.vmem [shape: f32[1,32], index: 3, kind: input, shape index: {}]   ;;  %s905_s4 = inlined_call_operand.hbm [shape: f32[32,128], index: 4, kind: input, shape index: {}]   ;;  %s906_s5 = inlined_call_operand.vmem [shape: f32[1,128], index: 5, kind: input, shape index: {}]   ;;  %s907_s6 = inlined_call_operand.vmem [shape: f32[16,32], index: 6, kind: input, shape index: {}]   ;;  %s908_s7 = inlined_call_operand.hbm [shape: f32[16,32], index: 7, kind: input, shape index: {}]   ;;  %s909_s8 = inlined_call_operand.vmem [shape: f32[1,32], index: 8, kind: input, shape index: {}]   ;;  %s910_s9 = inlined_call_operand.vmem [shape: f32[1,32], index: 9, kind: input, shape index: {}]   ;;  %s911_s10 = inlined_call_operand.<no memory space> [shape: f32[1,1], index: 10, kind: input, shape index: {}]   ;;  %s912_s11 = inlined_call_operand.hbm [shape: f32[8,128], index: 11, kind: output, shape index: {}]  }
   0x1   :  { %v16_v0 = vstv %s911_s10 }
   0x2   :  { %17 = vst [vmem:[#allocation2] sm:$0x1] %v16_v0 }
   0x3   :  { %18 = vsyncpa [#allocation4], 0 }
   0x4   :  { %19 = vsyncpa [#allocation7], 0 }
   0x5   :  { %20 = vsyncpa [#allocation10], 0 }
   0x6   :  { %21 = vsyncpa [#allocation5], 0  ;;  %s717_s19 = smov [#allocation6]   ;;  %s577_s23 = scalar_lea.hbm %s902_s1, 128 }
   0x7   :  { %s38_s20 = sshll.u32 %s717_s19, 4  ;;  %p578_p0 = scmp.ne.s32.totalorder %s902_s1, %s577_s23  ;;  %s39_s20 = int_to_ptr.vmem [resolvable:$true] %s38_s20 }
   0x8   :  { %p581_p1 = scmp.lt.u32.totalorder %s577_s23, %s902_s1 }
   0xa   :  { %p583_p2 = pnand %p581_p1, %p578_p0 }
   0xc   :  { %586 = shalt.err (!%p583_p2)
}
   0xd   :  { %s587_s10 = scalar_lea.vmem %s39_s20, 128  ;;  %p592_p4 = scmp.lt.s32.totalorder %s39_s20, %s39_s20 }
   0xe   :  { %p588_p3 = scmp.ne.s32.totalorder %s39_s20, %s587_s10  ;;  %p593_p5 = scmp.lt.s32.totalorder %s587_s10, %s587_s10 }
  0x10   :  { %p594_p6 = por %p593_p5, %p592_p4 }
  0x12   :  { %p595_p7 = pnand %p594_p6, %p588_p3 }
  0x14   :  { %598 = shalt.err (!%p595_p7)
}
  0x15   :  { %41 = dma.hbm_to_vmem [thread:$0]  %s902_s1, 128, %s39_s20, [#allocation7]  }
  0x16   :  { %s718_s30 = smov [#allocation9]   ;;  %s719_s13 = smov [#allocation3]  }
  0x17   :  { %s61_s12 = sshll.u32 %s718_s30, 4  ;;  %s28_s14 = sshll.u32 %s719_s13, 4  ;;  %s62_s12 = int_to_ptr.vmem [resolvable:$true] %s61_s12  ;;  %s29_s14 = int_to_ptr.vmem [resolvable:$true] %s28_s14 }
  0x18   :  { %s599_s17 = scalar_lea.hbm %s905_s4, 512 }
  0x19   :  { %p600_p8 = scmp.ne.s32.totalorder %s905_s4, %s599_s17  ;;  %p603_p9 = scmp.lt.u32.totalorder %s599_s17, %s905_s4 }
  0x1b   :  { %p605_p10 = pnand %p603_p9, %p600_p8 }
  0x1d   :  { %608 = shalt.err (!%p605_p10)
}
  0x1e   :  { %s609_s1 = scalar_lea.vmem %s62_s12, 512  ;;  %p614_p12 = scmp.lt.s32.totalorder %s62_s12, %s62_s12 }
  0x1f   :  { %p610_p11 = scmp.ne.s32.totalorder %s62_s12, %s609_s1  ;;  %p615_p13 = scmp.lt.s32.totalorder %s609_s1, %s609_s1 }
  0x21   :  { %p616_p0 = por %p615_p13, %p614_p12 }
  0x23   :  { %p617_p1 = pnand %p616_p0, %p610_p11 }
  0x25   :  { %620 = shalt.err (!%p617_p1)
}
  0x26   :  { %s720_s20 = smov 128   ;;  %s721_s23 = smov 8  }
  0x27   :  { %67 = dma.hbm_to_vmem [thread:$0]  %s905_s4, 512, %s62_s12, [#allocation10], %s720_s20, %s720_s20, %s721_s23  }
  0x28   :  { %s621_s10 = scalar_lea.hbm %s901_s0, 128 }
  0x29   :  { %p622_p2 = scmp.ne.s32.totalorder %s901_s0, %s621_s10  ;;  %p625_p3 = scmp.lt.u32.totalorder %s621_s10, %s901_s0 }
  0x2b   :  { %p627_p4 = pnand %p625_p3, %p622_p2 }
  0x2d   :  { %630 = shalt.err (!%p627_p4)
}
  0x2e   :  { %s631_s15 = scalar_lea.vmem %s29_s14, 128  ;;  %p636_p6 = scmp.lt.s32.totalorder %s29_s14, %s29_s14 }
  0x2f   :  { %p632_p5 = scmp.ne.s32.totalorder %s29_s14, %s631_s15  ;;  %p637_p7 = scmp.lt.s32.totalorder %s631_s15, %s631_s15 }
  0x31   :  { %p638_p8 = por %p637_p7, %p636_p6 }
  0x33   :  { %p639_p9 = pnand %p638_p8, %p632_p5 }
  0x35   :  { %642 = shalt.err (!%p639_p9)
}
  0x36   :  { %31 = dma.hbm_to_vmem [thread:$0]  %s901_s0, 128, %s29_s14, [#allocation4]  }
  0x37   :  { %s722_s16 = smov [#allocation8]   ;;  %s723_s18 = smov [#allocation11]  }
  0x38   :  { %s47_s17 = sshll.u32 %s722_s16, 4  ;;  %s77_s19 = sshll.u32 %s723_s18, 4  ;;  %s48_s17 = int_to_ptr.vmem [resolvable:$true] %s47_s17  ;;  %s78_s19 = int_to_ptr.vmem [resolvable:$true] %s77_s19 }
  0x39   :  { %s643_s1 = scalar_lea.hbm %s903_s2, 256 }
  0x3a   :  { %p644_p10 = scmp.ne.s32.totalorder %s903_s2, %s643_s1  ;;  %p647_p11 = scmp.lt.u32.totalorder %s643_s1, %s903_s2 }
  0x3c   :  { %p649_p12 = pnand %p647_p11, %p644_p10 }
  0x3e   :  { %652 = shalt.err (!%p649_p12)
}
  0x3f   :  { %s653_s0 = scalar_lea.vmem %s48_s17, 256  ;;  %p658_p0 = scmp.lt.s32.totalorder %s48_s17, %s48_s17 }
  0x40   :  { %p654_p13 = scmp.ne.s32.totalorder %s48_s17, %s653_s0  ;;  %p659_p1 = scmp.lt.s32.totalorder %s653_s0, %s653_s0 }
  0x42   :  { %p660_p2 = por %p659_p1, %p658_p0 }
  0x44   :  { %p661_p3 = pnand %p660_p2, %p654_p13 }
  0x46   :  { %664 = shalt.err (!%p661_p3)
}
  0x47   :  { %53 = dma.hbm_to_vmem [thread:$0]  %s903_s2, 256, %s48_s17, [#allocation7], %s720_s20, %s720_s20, %s721_s23  }
  0x48   :  { %s665_s30 = scalar_lea.hbm %s908_s7, 256 }
  0x49   :  { %p666_p4 = scmp.ne.s32.totalorder %s908_s7, %s665_s30  ;;  %p669_p5 = scmp.lt.u32.totalorder %s665_s30, %s908_s7 }
  0x4b   :  { %p671_p6 = pnand %p669_p5, %p666_p4 }
  0x4d   :  { %674 = shalt.err (!%p671_p6)
}
  0x4e   :  { %s675_s16 = scalar_lea.vmem %s78_s19, 256  ;;  %p680_p8 = scmp.lt.s32.totalorder %s78_s19, %s78_s19 }
  0x4f   :  { %p676_p7 = scmp.ne.s32.totalorder %s78_s19, %s675_s16  ;;  %p681_p9 = scmp.lt.s32.totalorder %s675_s16, %s675_s16 }
  0x51   :  { %p682_p10 = por %p681_p9, %p680_p8 }
  0x53   :  { %p683_p11 = pnand %p682_p10, %p676_p7 }
  0x55   :  { %686 = shalt.err (!%p683_p11)
}
  0x56   :  { %83 = dma.hbm_to_vmem [thread:$0]  %s908_s7, 256, %s78_s19, [#allocation10], %s720_s20, %s720_s20, %s721_s23  }
  0x57   :  { %709 = dma.done.wait [#allocation4], 128  }
  0x58   :  { %710 = vsyncadd [#allocation4], 4294967168 }
  0x59   :  { %711 = dma.done.wait [#allocation7], 384  }
  0x5a   :  { %712 = vsyncadd [#allocation7], 4294966912 }
  0x5b   :  { %713 = dma.done.wait [#allocation10], 768  }
  0x5c   :  { %714 = vsyncadd [#allocation10], 4294966528  ;;  %v724_v1 = vmov 0.0|0.0   ;;  %vm725_vm0 = vmmov 0   ;;  %v726_v2 = vmov 0.0   ;;  %v106_v3 = vld [vmem:[#allocation8] sm:$0xff]  ;;  %v462_v51 = vlaneseq }
  0x5d   :  { %545 = vmatprep.subr.bf16.mxu0 %v724_v1  ;;  %517 = vmatprep.mubr.msk.f32.mxu0 %vm725_vm0, %v726_v2  ;;  %v107_v4 = vld [vmem:[#allocation8 + $0x8] sm:$0xff]  ;;  %v190_v6 = vld [vmem:[#allocation9] sm:$0xff]  ;;  %v191_v7 = vld [vmem:[#allocation9 + $0x8] sm:$0xff]  ;;  %vm115_vm1 = vcmask 130048   ;;  %vm201_vm2 = vcmask 261120   ;;  %s727_s1 = smov 112  }
  0x5e   :  { %548 = vmatprep.subr.bf16.mxu1 %v724_v1  ;;  %528 = vmatprep.mubr.msk.f32.mxu1 %vm725_vm0, %v726_v2  ;;  %v546_v5 = vpack.c.bf16 %v107_v4, %v106_v3  ;;  %v549_v8 = vpack.c.bf16 %v191_v7, %v190_v6  ;;  %v105_v9 = vld [vmem:[#allocation3] sm:$0xff]  ;;  %v192_v10 = vld [vmem:[#allocation9 + $0x10] sm:$0xff]  ;;  %v193_v11 = vld [vmem:[#allocation9 + $0x18] sm:$0xff]  ;;  %v728_v47 = vmov 0   ;;  %v463_v52 = vand.u32 127, %v462_v51 }
  0x5f   :  { %v552_v12 = vpack.c.bf16 %v193_v11, %v192_v10  ;;  %v489_v13 = vld [vmem:[%s904_s3] ss:$0 sm:$0xff]  ;;  %v289_v18 = vld [vmem:[#allocation11] sm:$0xff]  ;;  %v290_v19 = vld [vmem:[#allocation11 + $0x8] sm:$0xff]  ;;  %573 = vset.pattern.permute.xlu1 %v728_v47  ;;  %574 = vset.pattern.permute.xlu0 %v728_v47 }
  0x60   :  { %547 = vmatpush3.bf16.msra.mxu0 %v546_v5  ;;  %550 = vmatpush3.bf16.msra.mxu1 %v549_v8  ;;  %v555_v20 = vpack.c.bf16 %v290_v19, %v289_v18  ;;  %v491_v21 = vld [vmem:[%s906_s5] ss:$0 sm:$0xff]  ;;  %v288_v28 = vld [vmem:[%s907_s6 + $0x8] sm:$0xff]  ;;  %vm464_vm3 = vcmp.eq.s32.totalorder %v463_v52, 32 }
  0x61   :  { %554 = vmatprep.subr.bf16.mxu0 %v724_v1  ;;  %551 = vmatprep.subr.bf16.mxu1 %v724_v1  ;;  %v287_v27 = vld [vmem:[%s907_s6] sm:$0xff]  ;;  %v280_v34 = vld [vmem:[#allocation6] sm:$0xff] }
  0x62   :  { %v558_v29 = vpack.c.bf16 %v288_v28, %v287_v27  ;;  %v496_v39 = vld [vmem:[%s909_s8] ss:$0 sm:$0xff]  ;;  %s729_s8 = smov [#allocation12]  }
  0x63   :  { %518 = vmatmul.mubr.msk.f32.vlgmr.msra.gmra.mrb[0].mxu0 %vm115_vm1, %v105_v9  ;;  %v497_v43 = vld [vmem:[%s910_s9] ss:$0 sm:$0xff]  ;;  %s478_s26 = sshll.u32 %s729_s8, 4  ;;  %s479_s26 = int_to_ptr.vmem [resolvable:$true] %s478_s26 }
  0x64   :  { %535 = vmatprep.mubr.msk.f32.mxu0 %vm725_vm0, %v726_v2  ;;  %553 = vmatpush3.bf16.msra.mxu1 %v552_v12  ;;  %v498_v48 = vld [vmem:[#allocation2] ss:$0 sm:$0xff]  ;;  %s687_s9 = scalar_lea.vmem %s479_s26, 128  ;;  %p692_p13 = scmp.lt.s32.totalorder %s479_s26, %s479_s26 }
  0x65   :  { %556 = vmatpush3.bf16.msra.mxu0 %v555_v20  ;;  %p688_p12 = scmp.ne.s32.totalorder %s479_s26, %s687_s9  ;;  %p693_p0 = scmp.lt.s32.totalorder %s687_s9, %s687_s9 }
  0x66   :  { %557 = vmatprep.subr.bf16.mxu0 %v724_v1 }
  0x67   :  { %p694_p1 = por %p693_p0, %p692_p13 }
  0x68   :  { %536 = vmatmul.mubr.msk.f32.vlgmr.msra.gmra.mrb[2].mxu0 %vm115_vm1, %v105_v9 }
  0x69   :  { %542 = vmatprep.mubr.msk.f32.mxu0 %vm725_vm0, %v726_v2  ;;  %559 = vmatpush3.bf16.msra.mxu0 %v558_v29  ;;  %p695_p2 = pnand %p694_p1, %p688_p12 }
 0x136   :  { %v185_v14 = vpop.f32.mrb[0].mxu0 }
 0x137   :  { %v186_v15 = vadd.f32 %v489_v13, %v185_v14  ;;  %v519_v16 = vpop.f32.mrb[1].mxu0 }
 0x139   :  { %v189_v17 = vmax.f32 %v186_v15, 0.0 }
 0x13b   :  { %529 = vmatmul.mubr.msk.f32.vlgmr.msra.gmra.mrb[0].mxu1 %vm201_vm2, %v189_v17  ;;  %v357_v32 = vpop.f32.mrb[2].mxu0 }
 0x13c   :  { %v537_v33 = vpop.f32.mrb[3].mxu0 }
 0x20e   :  { %v271_v22 = vpop.f32.mrb[0].mxu1 }
 0x20f   :  { %v272_v23 = vadd.f32 %v491_v21, %v271_v22  ;;  %v530_v24 = vpop.f32.mrb[1].mxu1 }
 0x211   :  { %v493_v25 = vclamps-f32 %v272_v23, 10.0 }
 0x213   :  { %v277_v26 = vmul.f32 0.5, %v493_v25 }
 0x215   :  { %v278_v30 = vmul.f32 1.442695, %v277_v26 }
 0x217   :  { %575 = vpow2.f32 %v278_v30 }
 0x221   :  { %v576_v31 = vpop.eup %575 }
 0x222   :  { %282 = vrot.lane.b32.xlu0 %v576_v31, %s727_s1 }
 0x294   :  { %v283_v35 = vpop.permute.xlu0 %282 }
 0x295   :  { %v285_v36 = vmul.f32 %v283_v35, %v280_v34 }
 0x297   :  { %v286_v37 = vadd.f32 %v493_v25, %v285_v36 }
 0x299   :  { %543 = vmatmul.mubr.msk.f32.vlgmr.msra.gmra.mrb[4].mxu0 %vm115_vm1, %v286_v37 }
 0x36c   :  { %v430_v38 = vpop.f32.mrb[4].mxu0 }
 0x36d   :  { %v431_v40 = vadd.f32 %v430_v38, %v357_v32  ;;  %v544_v41 = vpop.f32.mrb[5].mxu0 }
 0x36f   :  { %v441_v42 = vadd.f32 %v496_v39, %v431_v40 }
 0x371   :  { %v442_v44 = vmax.f32 %v441_v42, 0.0 }
 0x373   :  { %v450_v45 = vmul.f32 %v497_v43, %v442_v44 }
 0x375   :  { %v451_v46 = vsel %vm201_vm2, %v450_v45, 0.0 }
 0x376   :  { %452 = vadd.xlane.f32.xlu0 %v451_v46 }
 0x403   :  { %v453_v49 = vpop.xlane.xlu0 %452 }
 0x404   :  { %v461_v50 = vadd.f32 %v498_v48, %v453_v49 }
 0x406   :  { %467 = vperm.xlu1 %573, %v461_v50  }
 0x485   :  { %v468_v53 = vpop.permute.xlu1 %467 }
 0x486   :  { %v470_v54 = vsel %vm464_vm3, %v468_v53, %v272_v23 }
 0x487   :  { %471 = vst [vmem:[#allocation12] sm:$0xff] %v470_v54 }
 0x488   :  { %698 = shalt.err (!%p695_p2)
}
 0x489   :  { %s699_s14 = scalar_lea.hbm %s912_s11, 128 }
 0x48a   :  { %p700_p3 = scmp.ne.s32.totalorder %s912_s11, %s699_s14  ;;  %p703_p4 = scmp.lt.u32.totalorder %s699_s14, %s912_s11 }
 0x48c   :  { %p705_p5 = pnand %p703_p4, %p700_p3 }
 0x48e   :  { %708 = shalt.err (!%p705_p5)
}
 0x48f   :  { %481 = dma.vmem_to_hbm [thread:$0]  %s479_s26, 128, %s912_s11, [#allocation5]  }
 0x490   :  { %715 = dma.done.wait [#allocation5], 128  }
 0x491   :  { %716 = vsyncadd [#allocation5], 4294967168 }
 0x492   :  { %485 = vsyncpa [#allocation4], 1 }
 0x493   :  { %486 = vsyncpa [#allocation7], 1 }
 0x494   :  { %487 = vsyncpa [#allocation10], 1 }
 0x495   :  { %488 = vsyncpa [#allocation5], 1 }

</bundles_post_ra>
